<compile_context>
chip_gen: v5e
topology: v5e:2x2
jax: 0.10.0
libtpu: 0.0.40
codegen_flags: <defaults>
</compile_context>

<pallas_src>
import functools

import jax
import jax.numpy as jnp
import numpy as np
from jax.experimental import pallas as pl
from jax.experimental.pallas import tpu as pltpu


def _round_up(x: int, m: int) -> int:
    return (x + m - 1) // m * m


def _make_kernel(normalize_attn: bool, nb: int, C: int, T: int, S: int,
                 Tp: int, Sp: int):
    CT = C * Tp

    def kernel(w_ref, l_ref, c_ref, g_ref):
        # w_ref: (1, C*Tp)        flattened conv weight (zero-padded over T)
        # l_ref: (nb, C, Tp, Sp)  block of `nb` batch elements
        # c_ref: (1, nb, Sp)      conv logits (pre-activation), lane-dense
        # g_ref: (1, nb, C)       attended feature vectors
        l4 = l_ref[...]                                   # (nb, C, Tp, Sp)
        lf = l4.reshape(nb, CT, Sp)                       # pure relabel (Tp%8==0)

        # Conv3d(kernel=(T,1,1), bias=False) == batched (1,CT)@(CT,Sp) on MXU.
        w_b = jnp.broadcast_to(w_ref[...].reshape(1, 1, CT), (nb, 1, CT))
        logits3 = jax.lax.dot_general(
            w_b, lf,
            dimension_numbers=(((2,), (1,)), ((0,), (0,))),
            preferred_element_type=jnp.float32)           # (nb, 1, Sp)

        if normalize_attn:
            if Sp > S:
                lane = jax.lax.broadcasted_iota(jnp.int32, (nb, 1, Sp), 2)
                masked = jnp.where(lane < S, logits3, -jnp.inf)
            else:
                masked = logits3
            m = jnp.max(masked, axis=-1, keepdims=True)
            e = jnp.exp(masked - m)
            attn3 = e / jnp.sum(e, axis=-1, keepdims=True)    # softmax (nb,1,Sp)
        else:
            # Padded lanes give sigmoid(0)=0.5 but multiply zero-padded l, so
            # they contribute nothing to g.
            attn3 = jax.nn.sigmoid(logits3)

        # Attention weights broadcast over C and T: pre-sum l over T (cheap
        # VPU sublane reduce), then reduce over spatial on the MXU:
        #   g[n, c] = sum_s attn[n, s] * lsum[n, c, s]
        lsum = jnp.sum(l4, axis=2)                         # (nb, C, Sp)
        g3 = jax.lax.dot_general(
            attn3, lsum,
            dimension_numbers=(((2,), (2,)), ((0,), (0,))),
            preferred_element_type=jnp.float32)            # (nb, 1, C)
        if not normalize_attn:
            # adaptive_avg_pool3d to (1,1,1) == mean over the true T*W*H.
            g3 = g3 * (1.0 / float(T * S))

        c_ref[0] = logits3[:, 0, :].astype(c_ref.dtype)    # (nb, Sp)
        g_ref[0] = g3[:, 0, :].astype(g_ref.dtype)         # (nb, C)

    return kernel


@functools.partial(jax.jit, static_argnames=("normalize_attn",))
def linear_attention_block_3d(l, weight, normalize_attn=True):
    """l: (N, C, T, W, H), weight: (1, C, t_depth, 1, 1) with t_depth == T.

    Returns (c, g) with c: (N, 1, 1, W, H) and g: (N, C, 1), matching the
    PyTorch LinearAttentionBlock3D forward (softmax vs sigmoid path selected
    by normalize_attn).
    """
    N, C, T, W, H = l.shape
    S = W * H
    Tp = _round_up(T, 8)        # f32 sublane multiple
    Sp = _round_up(S, 128)      # lane multiple

    lr = l.reshape(N, C, T, S)
    wr = weight.reshape(C, T)
    if Tp != T or Sp != S:
        lr = jnp.pad(lr, ((0, 0), (0, 0), (0, Tp - T), (0, Sp - S)))
    if Tp != T:
        wr = jnp.pad(wr, ((0, 0), (0, Tp - T)))
    w_flat = wr.reshape(1, C * Tp)

    # Block-size heuristic: ~2 MiB of `l` per grid step (HBM-bound), but keep
    # >= 2 grid steps when N >= 2 so both v7x TensorCores are fed.  Blocks stay
    # well under the scoped VMEM limit on all generations (v7x included).
    # TODO(synk): for extreme C*T*S where one batch element alone exceeds the
    # VMEM budget, add an S grid axis with an online-softmax accumulator.
    itemsize = jnp.dtype(l.dtype).itemsize
    bytes_per_batch = C * Tp * Sp * itemsize
    target_block_bytes = 2 * 1024 * 1024
    nb = max(1, target_block_bytes // bytes_per_batch)
    nb = min(nb, N)
    if N > 1:
        nb = min(nb, (N + 1) // 2)
    grid = (N + nb - 1) // nb
    Npad = grid * nb
    if Npad != N:
        lr = jnp.pad(lr, ((0, Npad - N), (0, 0), (0, 0), (0, 0)))

    kernel = _make_kernel(normalize_attn, nb, C, T, S, Tp, Sp)

    c_out, g_out = pl.pallas_call(
        kernel,
        out_shape=(
            jax.ShapeDtypeStruct((grid, nb, Sp), l.dtype),
            jax.ShapeDtypeStruct((grid, nb, C), l.dtype),
        ),
        grid_spec=pltpu.PrefetchScalarGridSpec(
            num_scalar_prefetch=0,
            grid=(grid,),
            in_specs=[
                pl.BlockSpec((1, C * Tp), lambda n: (0, 0)),          # weight
                pl.BlockSpec((nb, C, Tp, Sp), lambda n: (n, 0, 0, 0)),
            ],
            out_specs=[
                pl.BlockSpec((1, nb, Sp), lambda n: (n, 0, 0)),
                pl.BlockSpec((1, nb, C), lambda n: (n, 0, 0)),
            ],
        ),
        compiler_params=pltpu.CompilerParams(
            dimension_semantics=("parallel",)),
    )(w_flat, lr)

    c = c_out.reshape(Npad, Sp)[:N, :S].reshape(N, 1, 1, W, H)
    g = g_out.reshape(Npad, C)[:N].reshape(N, C, 1)
    return c, g


def reference(l, weight, normalize_attn=True):
    """Pure-JAX reference mirroring the PyTorch forward."""
    N, C, T, W, H = l.shape
    w = weight.reshape(C, T)
    c = jnp.einsum("nctwh,ct->nwh", l, w).reshape(N, 1, 1, W, H)
    if normalize_attn:
        a = jax.nn.softmax(c.reshape(N, -1), axis=-1).reshape(N, 1, 1, W, H)
        g = (a * l).reshape(N, C, -1).sum(axis=-1).reshape(N, C, 1)
    else:
        a = jax.nn.sigmoid(c)
        g = (a * l).mean(axis=(2, 3, 4)).reshape(N, C, 1)
    return c, g


if __name__ == "__main__":
    # t_depth must equal T so the conv output time dim is 1 (the forward's
    # .view(N,1,1,W,H) requires it).
    N, C, T, W, H = 2, 4, 8, 16, 16

    key = jax.random.PRNGKey(0)
    k_l, k_w = jax.random.split(key)
    l = jax.random.normal(k_l, (N, C, T, W, H), dtype=jnp.float32)
    # Conv3d weight shape: (out_channels=1, in_channels=C, t_depth=T, 1, 1).
    bound = 1.0 / np.sqrt(C * T)
    weight = jax.random.uniform(k_w, (1, C, T, 1, 1), dtype=jnp.float32,
                                minval=-bound, maxval=bound)

    for normalize_attn in (True, False):
        c_k, g_k = linear_attention_block_3d(l, weight,
                                             normalize_attn=normalize_attn)
        jax.block_until_ready((c_k, g_k))
        c_r, g_r = reference(l, weight, normalize_attn=normalize_attn)
        np.testing.assert_allclose(np.asarray(c_k), np.asarray(c_r),
                                   rtol=1e-5, atol=1e-5)
        np.testing.assert_allclose(np.asarray(g_k), np.asarray(g_r),
                                   rtol=1e-5, atol=1e-5)

    print("KERNEL_OK")
</pallas_src>

<mosaic_0001>
module attributes {stable_mosaic.version = 11 : i64} {
  func.func @kernel(%arg0: i32, %arg1: memref<1x32xf32, #tpu.memory_space<vmem>>, %arg2: memref<1x4x8x256xf32, #tpu.memory_space<vmem>>, %arg3: memref<1x1x256xf32, #tpu.memory_space<vmem>>, %arg4: memref<1x1x4xf32, #tpu.memory_space<vmem>>) attributes {dimension_semantics = [#tpu.dimension_semantics<parallel>], iteration_bounds = array<i64: 2>, scalar_prefetch = 0 : i64, scratch_operands = 0 : i64, tpu.core_type = #tpu.core_type<tc>, window_params = [{pipeline_mode = #tpu.pipeline_mode<synchronous>, transform_indices = @transform_0, window_bounds = array<i64: 1, 32>}, {transform_indices = @transform_1, window_bounds = array<i64: 1, 4, 8, 256>}, {transform_indices = @transform_2, window_bounds = array<i64: 1, 1, 256>}, {transform_indices = @transform_3, window_bounds = array<i64: 1, 1, 4>}]} {
    %c0 = arith.constant 0 : index
    %c0_0 = arith.constant 0 : index
    %c0_1 = arith.constant 0 : index
    %c0_2 = arith.constant 0 : index
    %0 = vector.load %arg2[%c0, %c0_0, %c0_1, %c0_2] : memref<1x4x8x256xf32, #tpu.memory_space<vmem>>, vector<1x4x8x256xf32>
    %1 = vector.shape_cast %0 : vector<1x4x8x256xf32> to vector<1x32x256xf32>
    %c0_3 = arith.constant 0 : index
    %c0_4 = arith.constant 0 : index
    %2 = vector.load %arg1[%c0_3, %c0_4] : memref<1x32xf32, #tpu.memory_space<vmem>>, vector<1x32xf32>
    %3 = vector.shape_cast %2 : vector<1x32xf32> to vector<1x1x32xf32>
    %cst = arith.constant dense<0.000000e+00> : vector<1x1x256xf32>
    %4 = tpu.matmul %3, %1, %cst {dimension_numbers = #tpu.dot_dimension_numbers<[2], [1], [1], [2], [0, 0, 0, 1, 1, 2], [0], [0]>} : vector<1x1x32xf32>, vector<1x32x256xf32>, vector<1x1x256xf32> -> vector<1x1x256xf32>
    %cst_5 = arith.constant dense<0xFF800000> : vector<1x1xf32>
    %5 = vector.multi_reduction <maximumf>, %4, %cst_5 [2] : vector<1x1x256xf32> to vector<1x1xf32>
    %6 = vector.shape_cast %5 : vector<1x1xf32> to vector<1x1x1xf32>
    %7 = vector.broadcast %6 : vector<1x1x1xf32> to vector<1x1x256xf32>
    %8 = arith.subf %4, %7 : vector<1x1x256xf32>
    %9 = math.exp %8 : vector<1x1x256xf32>
    %cst_6 = arith.constant dense<0.000000e+00> : vector<1x1xf32>
    %10 = vector.multi_reduction <add>, %9, %cst_6 [2] : vector<1x1x256xf32> to vector<1x1xf32>
    %11 = vector.shape_cast %10 : vector<1x1xf32> to vector<1x1x1xf32>
    %12 = vector.broadcast %11 : vector<1x1x1xf32> to vector<1x1x256xf32>
    %13 = arith.divf %9, %12 : vector<1x1x256xf32>
    %cst_7 = arith.constant dense<0.000000e+00> : vector<1x4x256xf32>
    %14 = vector.multi_reduction <add>, %0, %cst_7 [2] : vector<1x4x8x256xf32> to vector<1x4x256xf32>
    %cst_8 = arith.constant dense<0.000000e+00> : vector<1x1x4xf32>
    %15 = tpu.matmul %13, %14, %cst_8 {dimension_numbers = #tpu.dot_dimension_numbers<[2], [2], [1], [1], [0, 0, 0, 1, 1, 1], [0], [0]>} : vector<1x1x256xf32>, vector<1x4x256xf32>, vector<1x1x4xf32> -> vector<1x1x4xf32>
    %16 = vector.shape_cast %4 : vector<1x1x256xf32> to vector<1x256xf32>
    %c0_9 = arith.constant 0 : index
    %c0_10 = arith.constant 0 : index
    %c0_11 = arith.constant 0 : index
    %17 = vector.load %arg3[%c0_9, %c0_10, %c0_11] : memref<1x1x256xf32, #tpu.memory_space<vmem>>, vector<1x1x256xf32>
    %18 = vector.shape_cast %17 : vector<1x1x256xf32> to vector<1x256xf32>
    %19 = vector.shape_cast %16 : vector<1x256xf32> to vector<1x1x256xf32>
    tpu.vector_store %arg3[%c0_9, %c0_10, %c0_11], %19 {strides = array<i32>} : memref<1x1x256xf32, #tpu.memory_space<vmem>>, vector<1x1x256xf32>,
    %20 = vector.shape_cast %15 : vector<1x1x4xf32> to vector<1x4xf32>
    %c0_12 = arith.constant 0 : index
    %c0_13 = arith.constant 0 : index
    %c0_14 = arith.constant 0 : index
    %21 = vector.load %arg4[%c0_12, %c0_13, %c0_14] : memref<1x1x4xf32, #tpu.memory_space<vmem>>, vector<1x1x4xf32>
    %22 = vector.shape_cast %21 : vector<1x1x4xf32> to vector<1x4xf32>
    %23 = vector.shape_cast %20 : vector<1x4xf32> to vector<1x1x4xf32>
    tpu.vector_store %arg4[%c0_12, %c0_13, %c0_14], %23 {strides = array<i32>} : memref<1x1x4xf32, #tpu.memory_space<vmem>>, vector<1x1x4xf32>,
    return
  }
  func.func @transform_0(%arg0: i32) -> (i32, i32) {
    %c0_i32 = arith.constant 0 : i32
    %c0_i32_0 = arith.constant 0 : i32
    %c0_i32_1 = arith.constant 0 : i32
    return %c0_i32, %c0_i32_0 : i32, i32
  }
  func.func @transform_1(%arg0: i32) -> (i32, i32, i32, i32) {
    %c0_i32 = arith.constant 0 : i32
    %c0_i32_0 = arith.constant 0 : i32
    %c0_i32_1 = arith.constant 0 : i32
    %c0_i32_2 = arith.constant 0 : i32
    return %arg0, %c0_i32, %c0_i32_0, %c0_i32_1 : i32, i32, i32, i32
  }
  func.func @transform_2(%arg0: i32) -> (i32, i32, i32) {
    %c0_i32 = arith.constant 0 : i32
    %c0_i32_0 = arith.constant 0 : i32
    %c0_i32_1 = arith.constant 0 : i32
    return %arg0, %c0_i32, %c0_i32_0 : i32, i32, i32
  }
  func.func @transform_3(%arg0: i32) -> (i32, i32, i32) {
    %c0_i32 = arith.constant 0 : i32
    %c0_i32_0 = arith.constant 0 : i32
    %c0_i32_1 = arith.constant 0 : i32
    return %arg0, %c0_i32, %c0_i32_0 : i32, i32, i32
  }
}

</mosaic_0001>

<bundles_post_ra>
// kernel: linear_attention_block_3d.1
= control target key start
LH: loop header
LB: loop body
LE: loop exit
PB: predicated region body
PF: predicated region fallthrough
CT: control target
= control target key end

     0   :  { %9 = vsyncpa [#allocation3], 0  ;;  %s742_s0 = inlined_call_operand.vmem [shape: f32[1,32], index: 0, kind: input, shape index: {}]   ;;  %s743_s1 = inlined_call_operand.vmem [shape: f32[2,4,8,256], index: 1, kind: input, shape index: {}]   ;;  %s744_s2 = inlined_call_operand.vmem [shape: f32[2,1,256], index: 2, kind: output, shape index: {0}]   ;;  %s745_s3 = inlined_call_operand.hbm [shape: f32[2,1,4], index: 3, kind: output, shape index: {1}]  }
   0x1   :  { %11 = vsyncpa [#allocation3 + $0x1], 0  ;;  %s624_s12 = smov 0   ;;  %s626_s13 = smov 0  }
   0x2   :  { %s628_s14 = smov 0   ;;  %s630_s15 = smov 0  }
   0x3 LB: > { %s645_s16 = sadd.s32 4294967295, %s602_s15   ;;  %s483_s17 = sadd.s32 4294967294, %s602_s15   ;;  %s602_s15 = sphi %s630_s15, %s751_s15   ;;  %s598_s14 = sphi %s628_s14, %s750_s14   ;;  %s594_s13 = sphi %s626_s13, %s749_s13   ;;  %s590_s12 = sphi %s624_s12, %s748_s12  }
   0x4   : > { %s649_s18 = sadd.s32 1, %s602_s15   ;;  %s97_s19 = sadd.s32 1, %s598_s14 }
   0x5   : > { %s94_s20 = ssub.s32 %s602_s15, %s649_s18  ;;  %p107_p0 = scmp.ne.s32.totalorder %s598_s14, %s594_s13 }
   0x6   : > { %p95_p1 = scmp.eq.s32.totalorder %s94_s20, 0  ;;  %p108_p2 = scmp.eq.s32.totalorder %s645_s16, 1 }
   0x7   : > { %p113_p3 = scmp.ne.s32.totalorder %s594_s13, %s590_s12  ;;  %p114_p4 = scmp.eq.s32.totalorder %s483_s17, 1 }
   0x8   : > { %s660_s21 = scalar_select %p95_p1, %s598_s14, %s97_s19  }
   0x9   : > { %p662_p5 = por %p108_p2, %p107_p0  ;;  %p666_p6 = por %p114_p4, %p113_p3 }
   0xa   : > { %p486_p7 = scmp.ge.s32.totalorder %s602_s15, 1  ;;  %p143_p8 = scmp.lt.s32.totalorder %s602_s15, 3 }
   0xc   : > { %p144_p9 = pnand %p486_p7, %p143_p8 }
   0xd   : > { %p170_p10 = scmp.lt.s32.totalorder (!%p144_p9), %s645_s16, 1  ;;  %s168_s8 = sand.u32 (!%p144_p9), 1, %s594_s13  }
   0xe   : > { %147 = sbr.rel (%p144_p9) target bundleno = 563 (0x233), region = 28  ;;  %s400_s11 = scalar_lea.hbm (!%p144_p9), %s745_s3, %s645_s16 }
   0xf   : > { %s169_s17 = scalar_lea.vmem (!%p144_p9), [#allocation2], %s168_s8  ;;  %s404_s20 = sshll.u32 (!%p144_p9), %s400_s11, 4  ;;  %s405_s20 = int_to_ptr.hbm [resolvable:$true] %s404_s20 }
  0x10   : > { %s402_s19 = sshll.u32 (!%p144_p9), %s169_s17, 4  ;;  %s403_s19 = int_to_ptr.vmem [resolvable:$true] %s402_s19 }
  0x13   : > { %s674_s24 = scalar_select %p170_p10, %s645_s16, 1  ;;  %v187_v8 = vld [vmem:[%s742_s0] sm:$0x1]  ;;  %vm188_vm0 = vcmask 261120   ;;  %v377_v9 = vlaneseq  ;;  %vm232_vm1 = vcmask 1040384   ;;  %vm321_vm3 = vcmask 1041409  }
  0x14   : > { %vm323_vm4 = vcmask 1042434   ;;  %vm325_vm5 = vcmask 1043459   ;;  %vm382_vm10 = vcmask 24576  }
  0x15   : > { %s494_s25 = sshll.u32 %s674_s24, 6  ;;  %s489_s4 = sshll.u32 %s674_s24, 1  ;;  %vm379_vm2 = vcmp.lt.s32.totalorder %v377_v9, 256 }
  0x16   : > { %s174_s28 = scalar_lea.vmem %s743_s1, %s494_s25  ;;  %s178_s7 = scalar_lea.vmem %s744_s2, %s489_s4 }
  0x17   : > { %v680_v0 = vld [vmem:[%s174_s28 + $0x30] sm:$0xff]  ;;  %v682_v1 = vld [vmem:[%s174_s28 + $0x38] sm:$0xff]  ;;  %v183_v2 = vld [vmem:[%s174_s28 + $0x20] sm:$0xff]  ;;  %s389_s24 = scalar_lea.sflag [#allocation3], %s168_s8  ;;  %s554_s25 = sshra.s32 %s405_s20, 4  ;;  %s555_s25 = int_to_ptr.hbm [resolvable:$true] %s554_s25 }
  0x18   : > { %204 = vmatpush.msra.mxu0 %v680_v0  ;;  %224 = vmatpush.msra.mxu1 %v682_v1  ;;  %v184_v3 = vld [vmem:[%s174_s28 + $0x28] sm:$0xff]  ;;  %v181_v4 = vld [vmem:[%s174_s28 + $0x10] sm:$0xff]  ;;  %v182_v5 = vld [vmem:[%s174_s28 + $0x18] sm:$0xff]  ;;  %v289_v31 = vrot.slane %v183_v2, 4  ;;  %v301_v37 = vrot.slane %v680_v0, 4  ;;  %v307_v39 = vrot.slane %v682_v1, 4  ;;  %p561_p0 = scmp.lt.s32.totalorder %s555_s25, %s745_s3 }
  0x19   : > { %v179_v6 = vld [vmem:[%s174_s28] sm:$0xff]  ;;  %v180_v7 = vld [vmem:[%s174_s28 + $0x8] sm:$0xff]  ;;  %v277_v27 = vrot.slane %v181_v4, 4  ;;  %v283_v29 = vrot.slane %v182_v5, 4  ;;  %v295_v32 = vrot.slane %v184_v3, 4  ;;  %s556_s26 = scalar_lea.hbm %s555_s25, 1 }
  0x1a   : > { %205 = vmatpush.msra.mxu0 %v183_v2  ;;  %225 = vmatpush.msra.mxu1 %v184_v3  ;;  %v265_v28 = vrot.slane %v179_v6, 4  ;;  %v271_v30 = vrot.slane %v180_v7, 4  ;;  %v290_v38 = vadd.f32 %v289_v31, %v183_v2  ;;  %v302_v45 = vadd.f32 %v301_v37, %v680_v0  ;;  %p557_p11 = scmp.ne.s32.totalorder %s555_s25, %s556_s26  ;;  %s560_s28 = scalar_lea.hbm %s745_s3, 2 }
  0x1b   : > { %v278_v33 = vadd.f32 %v277_v27, %v181_v4  ;;  %v284_v35 = vadd.f32 %v283_v29, %v182_v5  ;;  %v296_v40 = vadd.f32 %v295_v32, %v184_v3  ;;  %v308_v47 = vadd.f32 %v307_v39, %v682_v1  ;;  %p562_p1 = scmp.lt.s32.totalorder %s560_s28, %s556_s26 }
  0x1c   : > { %206 = vmatpush.msra.mxu0 %v181_v4  ;;  %226 = vmatpush.msra.mxu1 %v182_v5  ;;  %v266_v34 = vadd.f32 %v265_v28, %v179_v6  ;;  %v272_v36 = vadd.f32 %v271_v30, %v180_v7  ;;  %v291_v46 = vrot.slane %v290_v38, 2  ;;  %v303_v53 = vrot.slane %v302_v45, 2  ;;  %p558_p12 = pnand %p557_p11, %p662_p5 }
  0x1d   : > { %v279_v41 = vrot.slane %v278_v33, 2  ;;  %v285_v43 = vrot.slane %v284_v35, 2  ;;  %v297_v48 = vrot.slane %v296_v40, 2  ;;  %v309_v55 = vrot.slane %v308_v47, 2  ;;  %p563_p2 = por %p562_p1, %p561_p0 }
  0x1e   : > { %207 = vmatpush.msra.mxu0 %v179_v6  ;;  %227 = vmatpush.msra.mxu1 %v180_v7  ;;  %v267_v42 = vrot.slane %v266_v34, 2  ;;  %v273_v44 = vrot.slane %v272_v36, 2  ;;  %v292_v54 = vadd.f32 %v291_v46, %v290_v38  ;;  %v304_v61 = vadd.f32 %v303_v53, %v302_v45  ;;  %p559_p13 = pneg %p558_p12 }
  0x1f   : > { %490 = vmatmul.msk.f32.vlgmr.msra.gmra.mxu0 %vm188_vm0, %v187_v8  ;;  %491 = vmatmul.msk.f32.vlgmr.msra.gmra.mxu1 %vm188_vm0, %v187_v8  ;;  %v280_v49 = vadd.f32 %v279_v41, %v278_v33  ;;  %v286_v51 = vadd.f32 %v285_v43, %v284_v35  ;;  %v298_v56 = vadd.f32 %v297_v48, %v296_v40 }
  0x20   : > { %v268_v50 = vadd.f32 %v267_v42, %v266_v34  ;;  %v274_v52 = vadd.f32 %v273_v44, %v272_v36  ;;  %v293_v62 = vrot.slane %v292_v54, 1  ;;  %v310_v63 = vadd.f32 %v309_v55, %v308_v47  ;;  %p564_p3 = pnand %p563_p2, %p559_p13 }
  0x21   : > { %v281_v57 = vrot.slane %v280_v49, 1  ;;  %v287_v59 = vrot.slane %v286_v51, 1  ;;  %v299_v0 = vrot.slane %v298_v56, 1  ;;  %v305_v6 = vrot.slane %v304_v61, 1 }
  0x22   : > { %v269_v58 = vrot.slane %v268_v50, 1  ;;  %v275_v60 = vrot.slane %v274_v52, 1  ;;  %v294_v5 = vadd.f32 %v293_v62, %v292_v54  ;;  %v311_v9 = vrot.slane %v310_v63, 1 }
  0x23   : > { %v282_v2 = vadd.f32 %v281_v57, %v280_v49  ;;  %v288_v1 = vadd.f32 %v287_v59, %v286_v51  ;;  %v300_v8 = vadd.f32 %v299_v0, %v298_v56 }
  0x24   : > { %v270_v3 = vadd.f32 %v269_v58, %v268_v50  ;;  %v276_v4 = vadd.f32 %v275_v60, %v274_v52 }
  0x26   : > { %v322_v7 = vsel %vm321_vm3, %v282_v2, %v270_v3 }
  0x9c   : > { %v209_v10 = vpop.f32.mrf.mxu0  ;;  %v229_v11 = vpop.f32.mrf.mxu1 }
  0x9d   : > { %v374_v12 = vrot.slane %v229_v11, 7  ;;  %v233_v13 = vsel %vm232_vm1, %v209_v10, -inf  ;;  %v234_v14 = vsel %vm232_vm1, %v229_v11, -inf }
  0x9e   : > { %v235_v15 = vmax.f32 %v233_v13, %v234_v14  ;;  %v312_v13 = vadd.f32 %v311_v9, %v310_v63 }
  0x9f   : > { %v375_v16 = vsel %vm232_vm1, %v209_v10, %v374_v12  ;;  %v327_v12 = vsel %vm321_vm3, %v288_v1, %v276_v4 }
  0xa0   : > { %381 = vst.msk [vmem:[%s178_s7] sm:$0x3] %vm379_vm2, %v375_v16  ;;  %236 = vmax.xlane.f32.xlu0 %v235_v15  ;;  %v328_v14 = vsel %vm323_vm4, %v300_v8, %v327_v12 }
  0xa1   : > { %v329_v16 = vsel %vm325_vm5, %v312_v13, %v328_v14 }
  0xa2   : > { %367 = vmatpush.xpose.msra.mxu3 %v329_v16 }
 0x113   : > { %v237_v17 = vpop.xlane.xlu0 %236 }
 0x114   : > { %v238_v18 = vsub.f32 %v209_v10, %v237_v17  ;;  %v239_v19 = vsub.f32 %v229_v11, %v237_v17  ;;  %v306_v10 = vadd.f32 %v305_v6, %v304_v61  ;;  %v324_v11 = vsel %vm323_vm4, %v294_v5, %v322_v7 }
 0x116   : > { %v240_v20 = vmul.f32 1.442695, %v238_v18  ;;  %v242_v21 = vmul.f32 1.442695, %v239_v19  ;;  %v326_v15 = vsel %vm325_vm5, %v306_v10, %v324_v11 }
 0x117   : > { %347 = vmatpush.xpose.msra.mxu2 %v326_v15 }
 0x118   : > { %534 = vpow2.f32 %v240_v20 }
 0x119   : > { %536 = vpow2.f32 %v242_v21 }
 0x11e   : > { %v696_v22 = vpop.eup %534 }
 0x11f   : > { %v698_v23 = vpop.eup %536  ;;  %v244_v24 = vsel %vm232_vm1, %v696_v22, 0.0 }
 0x120   : > { %v245_v25 = vsel %vm232_vm1, %v698_v23, 0.0 }
 0x121   : > { %v246_v26 = vadd.f32 %v245_v25, %v244_v24 }
 0x123   : > { %247 = vadd.xlane.f32.xlu0 %v246_v26 }
 0x196   : > { %v248_v17 = vpop.xlane.xlu0 %247 }
 0x197   : > { %538 = vrcp.f32 %v248_v17  ;;  %v260_v21 = vand.u32 2147483648, %v248_v17  ;;  %v258_v25 = vand.u32 2147483647, %v248_v17  ;;  %vm254_vm7 = vweird.f32 %v248_v17 }
 0x199   : > { %v261_v27 = vor.u32 1.1754944e-38, %v260_v21  ;;  %vm259_vm9 = vcmp.eq.f32.partialorder %v258_v25, 8.507059e+37 }
 0x19d   : > { %v539_v18 = vpop.eup %538 }
 0x19e   : > { %v250_v19 = vmul.f32 %v539_v18, %v248_v17  ;;  %vm255_vm6 = vweird.f32 %v539_v18 }
 0x19f   : > { %vm256_vm8 = vmor %vm254_vm7, %vm255_vm6 }
 0x1a0   : > { %v251_v20 = vsub.f32 1.0, %v250_v19 }
 0x1a2   : > { %v252_v24 = vmul.f32 %v539_v18, %v251_v20 }
 0x1a4   : > { %v253_v26 = vadd.f32 %v539_v18, %v252_v24 }
 0x1a6   : > { %v257_v28 = vsel %vm256_vm8, %v539_v18, %v253_v26 }
 0x1a7   : > { %v262_v29 = vsel %vm259_vm9, %v261_v27, %v257_v28 }
 0x1a8   : > { %v263_v30 = vmul.f32 %v696_v22, %v262_v29  ;;  %v264_v31 = vmul.f32 %v698_v23, %v262_v29 }
 0x1aa   : > { %348 = vmatmul.f32.vlgmr.msra.gmra.mxu2 %v263_v30  ;;  %368 = vmatmul.f32.vlgmr.msra.gmra.mxu3 %v264_v31 }
 0x22d   : > { %v349_v32 = vpop.f32.mrf.mxu2  ;;  %v369_v33 = vpop.f32.mrf.mxu3 }
 0x22e   : > { %v370_v34 = vadd.f32 %v369_v33, %v349_v32 }
 0x230   : > { %383 = vst.msk [vmem:[%s169_s17] sm:$0x1] %vm382_vm10, %v370_v34 }
 0x231   : > { %567 = shalt.err (!%p564_p3)
}
 0x232   : > { %495 = dma.vmem_to_hbm [thread:$0]  (%p662_p5), %s403_s19, 16, %s405_s20, %s389_s24  }
 0x233 PF: > { %p501_p4 = scmp.ge.s32.totalorder %s602_s15, 2  ;;  %s423_s4 = sand.u32 1, %s590_s12  }
 0x234   : > { %s424_s5 = scalar_lea.sflag [#allocation3], %s423_s4 }
 0x235   : > { %p498_p7 = pnand %p501_p4, %p666_p6 }
 0x237   : > { %p499_p8 = pneg %p498_p7 }
 0x239   : > { %585 = dma.done.wait (%p499_p8), %s424_s5, 16  }
 0x23a   : > { %587 = vsyncadd (%p499_p8), %s424_s5, 4294967280  ;;  %p14_p9 = scmp.ge.s32.totalorder %s649_s18, 4   ;;  %s748_s12 = smov %s594_s13 }
 0x23b   : > { %s749_s13 = smov %s598_s14  ;;  %s750_s14 = smov %s660_s21 }
 0x23c   : > { %s751_s15 = smov %s649_s18  ;;  %16 = sbr.rel (!%p14_p9) target bundleno = 3 (0x3), region = 75 }
 0x241   :  { %429 = vsyncpa [#allocation3], 1 }
 0x242   :  { %431 = vsyncpa [#allocation3 + $0x1], 1 }

</bundles_post_ra>
